<compile_context>
chip_gen: v7x
topology: tpu7x:2x2x1
jax: 0.10.0
libtpu: 0.0.40
codegen_flags: <defaults>
</compile_context>

<pallas_src>
import math

import numpy as np
import jax
import jax.numpy as jnp
from jax.experimental import pallas as pl
from jax.experimental.pallas import tpu as pltpu


_TARGET_TILE_BYTES = 8 * 2**20      # target size of one streamed x tile


def _round_up(x, m):
    return ((x + m - 1) // m) * m


def _cdiv(a, b):
    return (a + b - 1) // b


def _vmem_budget_and_cap():
    """Generation-aware (working-set budget, vmem_limit_bytes cap)."""
    phys = 0
    try:
        phys = int(getattr(pltpu.get_tpu_info(), "vmem_capacity_bytes", 0))
    except Exception:
        phys = 0
    if phys <= 0:
        phys = 64 * 2**20                      # conservative default (v7x per-TC)
    if phys >= 100 * 2**20:                    # v5e / v6e: 128 MiB VMEM
        return 96 * 2**20, 110 * 2**20
    return 44 * 2**20, 56 * 2**20              # v7x: 64 MiB per TC, keep headroom


def _pick_tk(Kp, Hp, p_item, budget):
    """Largest 128-multiple divisor of Kp whose double-buffered W1^T tile
    stays under ~1/3 of the VMEM budget."""
    q = Kp // 128
    unit = 2 * 128 * Hp * p_item               # db'ed bytes per 128-wide K slice
    t_cap = max(1, min(q, (budget // 3) // unit))
    for t in range(t_cap, 0, -1):
        if q % t == 0:
            return 128 * t
    return 128


def _coxnnet_kernel(x_ref, w1t_ref, b1_ref, w2_ref, b2_ref, o_ref, acc_ref):
    k = pl.program_id(1)

    @pl.when(k == 0)
    def _():
        acc_ref[...] = jnp.zeros_like(acc_ref)

    # fc1 partial: (TB, TK) @ (TK, Hp) on the MXU, f32 accumulation in VMEM.
    acc_ref[...] += jnp.dot(x_ref[...], w1t_ref[...],
                            preferred_element_type=jnp.float32)

    @pl.when(k == pl.num_programs(1) - 1)
    def _():
        # Bias + tanh in f32 (EUP). Padded hidden columns stay tanh(0+0)=0.
        h = jnp.tanh(acc_ref[...] + b1_ref[...])
        # fc2 (N=1): keep it off the MXU -- VPU multiply + lane reduction.
        # Padded lanes of w2 are zero, so they contribute nothing.
        y = jnp.sum(h * w2_ref[...], axis=-1, keepdims=True) + b2_ref[...]
        o_ref[...] = y.astype(o_ref.dtype)     # true (TB, 1) store (tiny)


def coxnnet_prepare_params(w1, b1, w2, b2, *, param_dtype=jnp.bfloat16):
    """Pre-transpose / zero-pad parameters ONCE (outside the per-call forward).

    w1: (hidden, nfeat), b1: (hidden,), w2: (1, hidden), b2: (1,).
    Returns (w1t_p, b1_p, w2_p, b2_p):
      w1t_p: (Kp, Hp)  zero-padded transpose of w1, dtype=param_dtype (bf16 default)
      b1_p : (1, Hp)   f32
      w2_p : (1, Hp)   f32
      b2_p : (1, 1)    f32
    bf16 streaming halves HBM traffic; accumulation / bias / tanh stay f32.
    Use param_dtype=jnp.float32 for bit-level parity with the PyTorch f32 path.
    """
    hidden, nfeat = w1.shape
    Kp = _round_up(nfeat, 128)
    Hp = _round_up(hidden, 128)
    w1t_p = jnp.zeros((Kp, Hp), param_dtype).at[:nfeat, :hidden].set(
        w1.T.astype(param_dtype))
    b1_p = jnp.zeros((1, Hp), jnp.float32).at[:, :hidden].set(
        jnp.asarray(b1, jnp.float32).reshape(1, hidden))
    w2_p = jnp.zeros((1, Hp), jnp.float32).at[:, :hidden].set(
        jnp.asarray(w2, jnp.float32).reshape(1, hidden))
    b2_p = jnp.asarray(b2, jnp.float32).reshape(1, 1)
    return w1t_p, b1_p, w2_p, b2_p


def coxnnet_prepare_input(x, w1t_p):
    """Cast + feature-pad x ONCE, outside the per-call forward (avoids an
    extra full HBM pass over the dominant x stream on every call)."""
    Kp = w1t_p.shape[0]
    _, nfeat = x.shape
    if nfeat > Kp:
        raise ValueError("x has more features than the prepared parameters")
    x = x.astype(w1t_p.dtype)
    if nfeat != Kp:
        x = jnp.pad(x, ((0, 0), (0, Kp - nfeat)))
    return x


def coxnnet_forward(x, w1t_p, b1_p, w2_p, b2_p, *,
                    out_dtype=jnp.float32, tb=None, tk=None):
    """x: (B, Kp) prepared by coxnnet_prepare_input (or (B, nfeat): slow path
    pads/casts per call). Params from coxnnet_prepare_params. Returns (B, 1)."""
    Kp, Hp = w1t_p.shape
    B = x.shape[0]

    # Fallback slow path only if the caller did not pre-prepare x.
    if x.shape[1] != Kp or x.dtype != w1t_p.dtype:
        x = coxnnet_prepare_input(x, w1t_p)

    budget, vmem_cap = _vmem_budget_and_cap()
    p_item = w1t_p.dtype.itemsize
    x_item = x.dtype.itemsize
    o_item = np.dtype(out_dtype).itemsize

    # --- K tile: bound the resident double-buffered W1^T footprint. ---
    if tk is None:
        TK = _pick_tk(Kp, Hp, p_item, budget)
    else:
        TK = int(tk)
        assert TK % 128 == 0 and Kp % TK == 0, "tk must be a 128-multiple divisor of Kp"

    # Per-grid-step VMEM: db'ed x tile + f32 accumulator + db'ed (TB,1) output.
    fixed = 2 * TK * Hp * p_item + 2 * (2 * Hp * 4) + 2 * 4 + 4096
    per_row = 2 * TK * x_item + Hp * 4 + 2 * o_item

    # --- Batch tile: byte-targeted, VMEM-bounded, >=4 grid steps when B allows
    # so ("parallel",) can shard the batch axis across TensorCores (v7x). ---
    if tb is None:
        tb_vmem = max(8, ((budget - fixed) // per_row) // 8 * 8)
        tb_bytes = max(8, (_TARGET_TILE_BYTES // (TK * x_item)) // 8 * 8)
        rows8 = _round_up(B, 8)
        tb_steps = max(8, _round_up(_cdiv(rows8, 4), 8))
        TB = int(max(8, min(tb_vmem, tb_bytes, tb_steps)))
    else:
        TB = int(tb)
        assert TB % 8 == 0, "tb must be a multiple of 8"

    B_pad = _round_up(B, TB)
    if B_pad != B:
        x = jnp.pad(x, ((0, B_pad - B), (0, 0)))     # cheap batch-only padding

    nb = B_pad // TB
    nk = Kp // TK
    vmem_limit = int(min(vmem_cap,
                         max(int((fixed + TB * per_row) * 1.25), 32 * 2**20)))

    out = pl.pallas_call(
        _coxnnet_kernel,
        out_shape=jax.ShapeDtypeStruct((B_pad, 1), out_dtype),
        grid_spec=pltpu.PrefetchScalarGridSpec(
            num_scalar_prefetch=0,
            grid=(nb, nk),
            in_specs=[
                pl.BlockSpec((TB, TK), lambda i, k: (i, k)),   # x (streamed)
                pl.BlockSpec((TK, Hp), lambda i, k: (k, 0)),   # W1^T (K-tiled)
                pl.BlockSpec((1, Hp), lambda i, k: (0, 0)),    # b1 (resident)
                pl.BlockSpec((1, Hp), lambda i, k: (0, 0)),    # w2 row (resident)
                pl.BlockSpec((1, 1), lambda i, k: (0, 0)),     # b2 (resident)
            ],
            out_specs=pl.BlockSpec((TB, 1), lambda i, k: (i, 0)),
            scratch_shapes=[pltpu.VMEM((TB, Hp), jnp.float32)],  # fc1 accumulator
        ),
        compiler_params=pltpu.CompilerParams(
            dimension_semantics=("parallel", "arbitrary"),
            vmem_limit_bytes=vmem_limit),
    )(x, w1t_p, b1_p, w2_p, b2_p)

    return out[:B]


if __name__ == "__main__":
    def make_case(key, B, nfeat):
        hidden = int(math.ceil(nfeat ** 0.5))
        kx, kw1, kb1, kw2, kb2 = jax.random.split(key, 5)
        x = jax.random.normal(kx, (B, nfeat), dtype=jnp.float32)
        w1 = jax.random.normal(kw1, (hidden, nfeat), dtype=jnp.float32) * math.sqrt(
            2.0 / (nfeat + hidden))
        b1 = jax.random.normal(kb1, (hidden,), dtype=jnp.float32) * 0.01
        w2 = jax.random.normal(kw2, (1, hidden), dtype=jnp.float32) * math.sqrt(
            2.0 / (hidden + 1))
        b2 = jax.random.normal(kb2, (1,), dtype=jnp.float32) * 0.01
        return x, w1, b1, w2, b2

    def ref_forward(x, w1, b1, w2, b2):
        return jnp.tanh(x @ w1.T + b1) @ w2.T + b2

    key = jax.random.PRNGKey(0)
    k1, k2 = jax.random.split(key)

    # Case 1: small shape; verify exact numerics of the f32 path.
    x, w1, b1, w2, b2 = make_case(k1, B=4, nfeat=64)
    ref = ref_forward(x, w1, b1, w2, b2)

    params32 = coxnnet_prepare_params(w1, b1, w2, b2, param_dtype=jnp.float32)
    x32 = coxnnet_prepare_input(x, params32[0])
    out32 = jax.block_until_ready(coxnnet_forward(x32, *params32))
    assert out32.shape == (4, 1)
    assert jnp.allclose(out32, ref, atol=1e-5, rtol=1e-5), "f32 path mismatch"

    # Default bf16-streamed path (halves HBM traffic; f32 accumulation) --
    # looser tolerance due to bf16 quantization of x / W1.
    paramsbf = coxnnet_prepare_params(w1, b1, w2, b2)   # bf16 default
    xbf = coxnnet_prepare_input(x, paramsbf[0])
    outbf = jax.block_until_ready(coxnnet_forward(xbf, *paramsbf))
    assert outbf.shape == (4, 1)
    assert jnp.allclose(outbf, ref, atol=5e-2, rtol=5e-2), "bf16 path mismatch"

    # Case 2: exercise the K-split accumulator and multi-batch-tile grid.
    x2, w1b, b1b, w2b, b2b = make_case(k2, B=20, nfeat=300)  # Kp=384 -> 3 K tiles
    p2 = coxnnet_prepare_params(w1b, b1b, w2b, b2b, param_dtype=jnp.float32)
    x2p = coxnnet_prepare_input(x2, p2[0])
    out2 = jax.block_until_ready(coxnnet_forward(x2p, *p2, tb=8, tk=128))
    ref2 = ref_forward(x2, w1b, b1b, w2b, b2b)
    assert out2.shape == (20, 1)
    assert jnp.allclose(out2, ref2, atol=1e-5, rtol=1e-5), "K-split path mismatch"

    print("KERNEL_OK")
</pallas_src>

<mosaic_0001>
module attributes {stable_mosaic.version = 11 : i64} {
  func.func @_coxnnet_kernel(%arg0: i32, %arg1: i32, %arg2: memref<8x128xf32, #tpu.memory_space<vmem>>, %arg3: memref<128x128xf32, #tpu.memory_space<vmem>>, %arg4: memref<1x128xf32, #tpu.memory_space<vmem>>, %arg5: memref<1x128xf32, #tpu.memory_space<vmem>>, %arg6: memref<1x1xf32, #tpu.memory_space<vmem>>, %arg7: memref<8x1xf32, #tpu.memory_space<vmem>>, %arg8: memref<8x128xf32, #tpu.memory_space<vmem>>) attributes {dimension_semantics = [#tpu.dimension_semantics<parallel>, #tpu.dimension_semantics<arbitrary>], iteration_bounds = array<i64: 1, 1>, scalar_prefetch = 0 : i64, scratch_operands = 1 : i64, tpu.core_type = #tpu.core_type<tc>, window_params = [{transform_indices = @transform_0, window_bounds = array<i64: 8, 128>}, {transform_indices = @transform_1, window_bounds = array<i64: 128, 128>}, {pipeline_mode = #tpu.pipeline_mode<synchronous>, transform_indices = @transform_2, window_bounds = array<i64: 1, 128>}, {pipeline_mode = #tpu.pipeline_mode<synchronous>, transform_indices = @transform_3, window_bounds = array<i64: 1, 128>}, {pipeline_mode = #tpu.pipeline_mode<synchronous>, transform_indices = @transform_4, window_bounds = array<i64: 1, 1>}, {transform_indices = @transform_5, window_bounds = array<i64: 8, 1>}]} {
    %c0_i32 = arith.constant 0 : i32
    %0 = arith.cmpi eq, %arg1, %c0_i32 : i32
    %1 = arith.extui %0 : i1 to i32
    %c0_i32_0 = arith.constant 0 : i32
    %2 = arith.cmpi ne, %1, %c0_i32_0 : i32
    scf.if %2 {
      %cst_10 = arith.constant 0.000000e+00 : f32
      %12 = vector.broadcast %cst_10 : f32 to vector<8x128xf32>
      %c0_11 = arith.constant 0 : index
      %c0_12 = arith.constant 0 : index
      %13 = vector.load %arg8[%c0_11, %c0_12] : memref<8x128xf32, #tpu.memory_space<vmem>>, vector<8x128xf32>
      tpu.vector_store %arg8[%c0_11, %c0_12], %12 {strides = array<i32>} : memref<8x128xf32, #tpu.memory_space<vmem>>, vector<8x128xf32>,
    } else {
    }
    %c0 = arith.constant 0 : index
    %c0_1 = arith.constant 0 : index
    %3 = vector.load %arg8[%c0, %c0_1] : memref<8x128xf32, #tpu.memory_space<vmem>>, vector<8x128xf32>
    %c0_2 = arith.constant 0 : index
    %c0_3 = arith.constant 0 : index
    %4 = vector.load %arg2[%c0_2, %c0_3] : memref<8x128xf32, #tpu.memory_space<vmem>>, vector<8x128xf32>
    %c0_4 = arith.constant 0 : index
    %c0_5 = arith.constant 0 : index
    %5 = vector.load %arg3[%c0_4, %c0_5] : memref<128x128xf32, #tpu.memory_space<vmem>>, vector<128x128xf32>
    %cst = arith.constant dense<0.000000e+00> : vector<8x128xf32>
    %6 = tpu.matmul %4, %5, %cst {dimension_numbers = #tpu.dot_dimension_numbers<[1], [0], [0], [1], [0, 0, 1, 1], [], []>} : vector<8x128xf32>, vector<128x128xf32>, vector<8x128xf32> -> vector<8x128xf32>
    %7 = arith.addf %3, %6 : vector<8x128xf32>
    %c0_6 = arith.constant 0 : index
    %c0_7 = arith.constant 0 : index
    %8 = vector.load %arg8[%c0_6, %c0_7] : memref<8x128xf32, #tpu.memory_space<vmem>>, vector<8x128xf32>
    tpu.vector_store %arg8[%c0_6, %c0_7], %7 {strides = array<i32>} : memref<8x128xf32, #tpu.memory_space<vmem>>, vector<8x128xf32>,
    %c0_i32_8 = arith.constant 0 : i32
    %9 = arith.cmpi eq, %arg1, %c0_i32_8 : i32
    %10 = arith.extui %9 : i1 to i32
    %c0_i32_9 = arith.constant 0 : i32
    %11 = arith.cmpi ne, %10, %c0_i32_9 : i32
    scf.if %11 {
      %c0_10 = arith.constant 0 : index
      %c0_11 = arith.constant 0 : index
      %12 = vector.load %arg8[%c0_10, %c0_11] : memref<8x128xf32, #tpu.memory_space<vmem>>, vector<8x128xf32>
      %c0_12 = arith.constant 0 : index
      %c0_13 = arith.constant 0 : index
      %13 = vector.load %arg4[%c0_12, %c0_13] : memref<1x128xf32, #tpu.memory_space<vmem>>, vector<1x128xf32>
      %14 = vector.broadcast %13 : vector<1x128xf32> to vector<8x128xf32>
      %15 = arith.addf %12, %14 : vector<8x128xf32>
      %16 = math.tanh %15 : vector<8x128xf32>
      %c0_14 = arith.constant 0 : index
      %c0_15 = arith.constant 0 : index
      %17 = vector.load %arg5[%c0_14, %c0_15] : memref<1x128xf32, #tpu.memory_space<vmem>>, vector<1x128xf32>
      %18 = vector.broadcast %17 : vector<1x128xf32> to vector<8x128xf32>
      %19 = arith.mulf %16, %18 : vector<8x128xf32>
      %cst_16 = arith.constant dense<0.000000e+00> : vector<8xf32>
      %20 = vector.multi_reduction <add>, %19, %cst_16 [1] : vector<8x128xf32> to vector<8xf32>
      %21 = vector.shape_cast %20 : vector<8xf32> to vector<8x1xf32>
      %c0_17 = arith.constant 0 : index
      %c0_18 = arith.constant 0 : index
      %22 = vector.load %arg6[%c0_17, %c0_18] : memref<1x1xf32, #tpu.memory_space<vmem>>, vector<1x1xf32>
      %23 = vector.broadcast %22 : vector<1x1xf32> to vector<8x1xf32>
      %24 = arith.addf %21, %23 : vector<8x1xf32>
      %c0_19 = arith.constant 0 : index
      %c0_20 = arith.constant 0 : index
      %25 = vector.load %arg7[%c0_19, %c0_20] : memref<8x1xf32, #tpu.memory_space<vmem>>, vector<8x1xf32>
      tpu.vector_store %arg7[%c0_19, %c0_20], %24 {strides = array<i32>} : memref<8x1xf32, #tpu.memory_space<vmem>>, vector<8x1xf32>,
    } else {
    }
    return
  }
  func.func @transform_0(%arg0: i32, %arg1: i32) -> (i32, i32) {
    %c0_i32 = arith.constant 0 : i32
    return %arg0, %arg1 : i32, i32
  }
  func.func @transform_1(%arg0: i32, %arg1: i32) -> (i32, i32) {
    %c0_i32 = arith.constant 0 : i32
    %c0_i32_0 = arith.constant 0 : i32
    return %arg1, %c0_i32 : i32, i32
  }
  func.func @transform_2(%arg0: i32, %arg1: i32) -> (i32, i32) {
    %c0_i32 = arith.constant 0 : i32
    %c0_i32_0 = arith.constant 0 : i32
    %c0_i32_1 = arith.constant 0 : i32
    return %c0_i32, %c0_i32_0 : i32, i32
  }
  func.func @transform_3(%arg0: i32, %arg1: i32) -> (i32, i32) {
    %c0_i32 = arith.constant 0 : i32
    %c0_i32_0 = arith.constant 0 : i32
    %c0_i32_1 = arith.constant 0 : i32
    return %c0_i32, %c0_i32_0 : i32, i32
  }
  func.func @transform_4(%arg0: i32, %arg1: i32) -> (i32, i32) {
    %c0_i32 = arith.constant 0 : i32
    %c0_i32_0 = arith.constant 0 : i32
    %c0_i32_1 = arith.constant 0 : i32
    return %c0_i32, %c0_i32_0 : i32, i32
  }
  func.func @transform_5(%arg0: i32, %arg1: i32) -> (i32, i32) {
    %c0_i32 = arith.constant 0 : i32
    %c0_i32_0 = arith.constant 0 : i32
    return %arg0, %c0_i32 : i32, i32
  }
}

</mosaic_0001>

<bundles_post_ra>
// kernel: tpu_custom_call.1
= control target key start
LH: loop header
LB: loop body
LE: loop exit
PB: predicated region body
PF: predicated region fallthrough
CT: control target
= control target key end

     0   :  { %s398_s0 = inlined_call_operand.hbm [shape: f32[8,128], index: 0, kind: input, shape index: {}]   ;;  %s399_s1 = inlined_call_operand.hbm [shape: f32[128,128], index: 1, kind: input, shape index: {}]   ;;  %s400_s2 = inlined_call_operand.vmem [shape: f32[1,128], index: 2, kind: input, shape index: {}]   ;;  %s401_s3 = inlined_call_operand.vmem [shape: f32[1,128], index: 3, kind: input, shape index: {}]   ;;  %s402_s4 = inlined_call_operand.<no memory space> [shape: f32[1,1], index: 4, kind: input, shape index: {}]   ;;  %s403_s5 = inlined_call_operand.vmem [shape: f32[8,1], index: 5, kind: output, shape index: {}]  }
   0x1   :  { %v10_v0 = vstv %s402_s4 }
   0x2   :  { %11 = vst [vmem:[#allocation3] sm:$0x1] %v10_v0 }
   0x3   :  { %12 = vsyncpa [#allocation5], 0 }
   0x4   :  { %13 = vsyncpa [#allocation7], 0  ;;  %s318_s20 = smov [#allocation4]   ;;  %s319_s22 = smov [#allocation6]  }
   0x5   :  { %s20_s21 = sshll.u32 %s318_s20, 4  ;;  %s29_s23 = sshll.u32 %s319_s22, 4  ;;  %s21_s21 = int_to_ptr.vmem [resolvable:$true] %s20_s21  ;;  %s358_s23 = int_to_ptr.vmem [resolvable:$true] %s29_s23 }
   0x6   :  { %s270_s26 = scalar_lea.hbm %s398_s0, 128 }
   0x7   :  { %p271_p0 = scmp.ne.s32.totalorder %s398_s0, %s270_s26  ;;  %p274_p1 = scmp.lt.u32.totalorder %s270_s26, %s398_s0 }
   0x9   :  { %p276_p2 = pnand %p274_p1, %p271_p0 }
   0xb   :  { %279 = shalt.err (!%p276_p2)
}
   0xc   :  { %s280_s30 = scalar_lea.vmem %s21_s21, 128  ;;  %p285_p4 = scmp.lt.s32.totalorder %s21_s21, %s21_s21 }
   0xd   :  { %p281_p3 = scmp.ne.s32.totalorder %s21_s21, %s280_s30  ;;  %p286_p5 = scmp.lt.s32.totalorder %s280_s30, %s280_s30 }
   0xf   :  { %p287_p6 = por %p286_p5, %p285_p4 }
  0x11   :  { %p288_p7 = pnand %p287_p6, %p281_p3 }
  0x13   :  { %291 = shalt.err (!%p288_p7)
}
  0x14   :  { %23 = dma.hbm_to_vmem [thread:$0]  %s398_s0, 128, %s21_s21, [#allocation5]  }
  0x15   :  { %s292_s10 = scalar_lea.hbm %s399_s1, 2048 }
  0x16   :  { %p293_p8 = scmp.ne.s32.totalorder %s399_s1, %s292_s10  ;;  %p296_p9 = scmp.lt.u32.totalorder %s292_s10, %s399_s1 }
  0x18   :  { %p298_p10 = pnand %p296_p9, %p293_p8 }
  0x1a   :  { %301 = shalt.err (!%p298_p10)
}
  0x1b   :  { %s302_s15 = scalar_lea.vmem %s358_s23, 2048  ;;  %p307_p12 = scmp.lt.s32.totalorder %s358_s23, %s358_s23 }
  0x1c   :  { %p303_p11 = scmp.ne.s32.totalorder %s358_s23, %s302_s15  ;;  %p308_p13 = scmp.lt.s32.totalorder %s302_s15, %s302_s15 }
  0x1e   :  { %p309_p0 = por %p308_p13, %p307_p12 }
  0x20   :  { %p310_p1 = pnand %p309_p0, %p303_p11 }
  0x22   :  { %313 = shalt.err (!%p310_p1)
}
  0x23   :  { %s320_s0 = smov 128   ;;  %s321_s16 = smov 8  }
  0x24   :  { %35 = dma.hbm_to_vmem [thread:$0]  %s399_s1, 2048, %s358_s23, [#allocation7], %s320_s0, %s320_s0, %s321_s16  }
  0x25   :  { %314 = dma.done.wait [#allocation5], 128  }
  0x26   :  { %315 = vsyncadd [#allocation5], 4294967168 }
  0x27   :  { %316 = dma.done.wait [#allocation7], 2048  }
  0x28   :  { %317 = vsyncadd [#allocation7], 4294965248  ;;  %v322_v1 = vmov 0.0|0.0   ;;  %vm323_vm0 = vmmov 0   ;;  %v324_v2 = vmov 0.0   ;;  %v55_v3 = vld [vmem:[#allocation6] sm:$0xff] }
  0x29   :  { %237 = vmatprep.subr.bf16.mxu0 %v322_v1  ;;  %234 = vmatprep.mubr.msk.f32.mxu0 %vm323_vm0, %v324_v2  ;;  %v56_v4 = vld [vmem:[#allocation6 + $0x8] sm:$0xff]  ;;  %v57_v5 = vld [vmem:[#allocation6 + $0x10] sm:$0xff]  ;;  %v58_v7 = vld [vmem:[#allocation6 + $0x18] sm:$0xff]  ;;  %vm174_vm1 = vcmask 7168  }
  0x2a   :  { %v238_v6 = vpack.c.bf16 %v56_v4, %v55_v3  ;;  %v241_v8 = vpack.c.bf16 %v58_v7, %v57_v5  ;;  %v59_v9 = vld [vmem:[#allocation6 + $0x20] sm:$0xff]  ;;  %v60_v10 = vld [vmem:[#allocation6 + $0x28] sm:$0xff]  ;;  %v61_v12 = vld [vmem:[#allocation6 + $0x30] sm:$0xff] }
  0x2b   :  { %v244_v11 = vpack.c.bf16 %v60_v10, %v59_v9  ;;  %v62_v13 = vld [vmem:[#allocation6 + $0x38] sm:$0xff]  ;;  %v63_v15 = vld [vmem:[#allocation6 + $0x40] sm:$0xff]  ;;  %v64_v16 = vld [vmem:[#allocation6 + $0x48] sm:$0xff] }
  0x2c   :  { %239 = vmatpush3.bf16.msra.mxu0 %v238_v6  ;;  %v247_v14 = vpack.c.bf16 %v62_v13, %v61_v12  ;;  %v250_v17 = vpack.c.bf16 %v64_v16, %v63_v15  ;;  %v65_v18 = vld [vmem:[#allocation6 + $0x50] sm:$0xff]  ;;  %v66_v19 = vld [vmem:[#allocation6 + $0x58] sm:$0xff]  ;;  %v67_v21 = vld [vmem:[#allocation6 + $0x60] sm:$0xff] }
  0x2d   :  { %240 = vmatprep.subr.bf16.mxu0 %v322_v1  ;;  %v253_v20 = vpack.c.bf16 %v66_v19, %v65_v18  ;;  %v68_v22 = vld [vmem:[#allocation6 + $0x68] sm:$0xff]  ;;  %v69_v24 = vld [vmem:[#allocation6 + $0x70] sm:$0xff]  ;;  %v70_v25 = vld [vmem:[#allocation6 + $0x78] sm:$0xff] }
  0x2e   :  { %v256_v23 = vpack.c.bf16 %v68_v22, %v67_v21  ;;  %v259_v26 = vpack.c.bf16 %v70_v25, %v69_v24  ;;  %v54_v27 = vld [vmem:[#allocation4] sm:$0xff]  ;;  %v182_v28 = vld [vmem:[%s400_s2] ss:$0 sm:$0xff] }
  0x2f   :  { %v183_v32 = vld [vmem:[%s401_s3] ss:$0 sm:$0xff] }
  0x30   :  { %242 = vmatpush3.bf16.msra.mxu0 %v241_v8  ;;  %v184_v35 = vld [vmem:[#allocation3] ss:$0 sm:$0xff] }
  0x31   :  { %243 = vmatprep.subr.bf16.mxu0 %v322_v1 }
  0x34   :  { %245 = vmatpush3.bf16.msra.mxu0 %v244_v11 }
  0x35   :  { %246 = vmatprep.subr.bf16.mxu0 %v322_v1 }
  0x38   :  { %248 = vmatpush3.bf16.msra.mxu0 %v247_v14 }
  0x39   :  { %249 = vmatprep.subr.bf16.mxu0 %v322_v1 }
  0x3c   :  { %251 = vmatpush3.bf16.msra.mxu0 %v250_v17 }
  0x3d   :  { %252 = vmatprep.subr.bf16.mxu0 %v322_v1 }
  0x40   :  { %254 = vmatpush3.bf16.msra.mxu0 %v253_v20 }
  0x41   :  { %255 = vmatprep.subr.bf16.mxu0 %v322_v1 }
  0x44   :  { %257 = vmatpush3.bf16.msra.mxu0 %v256_v23 }
  0x45   :  { %258 = vmatprep.subr.bf16.mxu0 %v322_v1 }
  0x48   :  { %260 = vmatpush3.bf16.msra.mxu0 %v259_v26 }
  0x4b   :  { %235 = vmatmul.mubr.f32.vlgmr.msra.gmra.mrb[0].mxu0 %v54_v27 }
 0x11e   :  { %v137_v29 = vpop.f32.mrb[0].mxu0 }
 0x11f   :  { %v154_v30 = vadd.f32 %v182_v28, %v137_v29  ;;  %v236_v31 = vpop.f32.mrb[1].mxu0 }
 0x121   :  { %268 = vtanh.f32 %v154_v30 }
 0x12b   :  { %v269_v33 = vpop.eup %268 }
 0x12c   :  { %v163_v34 = vmul.f32 %v269_v33, %v183_v32 }
 0x12e   :  { %164 = vadd.xlane.f32.xlu0 %v163_v34 }
 0x1bb   :  { %v165_v36 = vpop.xlane.xlu0 %164 }
 0x1bc   :  { %v173_v37 = vadd.f32 %v184_v35, %v165_v36 }
 0x1be   :  { %175 = vst.msk [vmem:[%s403_s5] sm:$0xff] %vm174_vm1, %v173_v37 }
 0x1bf   :  { %180 = vsyncpa [#allocation5], 1 }
 0x1c0   :  { %181 = vsyncpa [#allocation7], 1 }

</bundles_post_ra>
